<compile_context>
chip_gen: v7x
topology: tpu7x:2x2x1
jax: 0.10.0
libtpu: 0.0.40
codegen_flags: <defaults>
</compile_context>

<pallas_src>
import jax
import jax.numpy as jnp
from jax.experimental import pallas as pl
from jax.experimental.pallas import tpu as pltpu


def _transpose_tile_kernel(x_ref, o_ref):
    # x_ref: (C, TA) input tile for the current (batch, anchor-tile) grid step.
    # o_ref: (TA, C) output tile.
    o_ref[...] = jnp.transpose(x_ref[...], (1, 0))


def _pick_anchor_tile(a, target=1024):
    """Choose the anchor-axis tile size TA.

    - Small anchor axis: take it whole (block == full dim is always legal
      w.r.t. the (8,128) rule; grid still has N steps).
    - Otherwise prefer the largest multiple of 128 <= target that divides A
      evenly (no ragged tail).  If none exists (e.g. A = 8400), use `target`
      and let the cdiv grid handle the partial last tile.
    """
    if a <= target:
        return a
    best = 0
    t = 128
    while t <= target:
        if a % t == 0:
            best = t
        t += 128
    return best if best else target


def deepstream_output(x, *, anchor_tile=None):
    """DeepStreamOutput.forward: (N, C, A) -> (N, A, C), i.e. transpose(1, 2)."""
    n, c, a = x.shape
    ta = _pick_anchor_tile(a) if anchor_tile is None else anchor_tile
    num_anchor_tiles = pl.cdiv(a, ta)

    itemsize = jnp.dtype(x.dtype).itemsize
    cost = pl.CostEstimate(
        flops=0,
        transcendentals=0,
        bytes_accessed=2 * n * c * a * itemsize,  # read + write, pure bandwidth
    )

    return pl.pallas_call(
        _transpose_tile_kernel,
        out_shape=jax.ShapeDtypeStruct((n, a, c), x.dtype),
        grid_spec=pltpu.PrefetchScalarGridSpec(
            num_scalar_prefetch=0,
            grid=(n, num_anchor_tiles),
            in_specs=[
                # Batch dim squeezed; kernel sees a (C, TA) slab.  C (=56) is the
                # full second-to-last dim, TA is a multiple of 128 (or full A),
                # so the (8,128) BlockSpec rule is satisfied.
                pl.BlockSpec((None, c, ta), lambda b, t: (b, 0, t)),
            ],
            # (TA, C) output tile: TA is a multiple of 8, C is the full last dim.
            out_specs=pl.BlockSpec((None, ta, c), lambda b, t: (b, t, 0)),
        ),
        compiler_params=pltpu.CompilerParams(
            # Both axes are independent copies; "parallel" lets megacore (v7x)
            # shard the anchor axis across TensorCores even at N == 1.
            dimension_semantics=("parallel", "parallel"),
        ),
        cost_estimate=cost,
    )(x)


if __name__ == "__main__":
    key = jax.random.PRNGKey(0)

    # Small YOLOv8-pose-like head: batch=2, channels=56 (4+1+17*3), anchors=512.
    n, c, a = 2, 56, 512
    x = jax.random.normal(key, (n, c, a), dtype=jnp.float32)
    ref = jnp.transpose(x, (0, 2, 1))  # == torch transpose(1, 2)

    # Default tile selection (small A -> whole anchor axis per block).
    out = jax.block_until_ready(deepstream_output(x))
    assert out.shape == (n, a, c), out.shape
    assert out.dtype == x.dtype
    assert jnp.array_equal(out, ref), "mismatch vs reference transpose (default tiling)"

    # Force a small anchor tile to exercise the multi-tile pipelined path
    # (grid = (2, 4)) that production-sized A (~8400) would take.
    out_tiled = jax.block_until_ready(deepstream_output(x, anchor_tile=128))
    assert jnp.array_equal(out_tiled, ref), "mismatch vs reference transpose (tiled)"

    print("KERNEL_OK")
</pallas_src>

<mosaic_0001>
module attributes {stable_mosaic.version = 11 : i64} {
  func.func @_transpose_tile_kernel(%arg0: i32, %arg1: i32, %arg2: memref<1x56x512xf32, #tpu.memory_space<vmem>>, %arg3: memref<1x512x56xf32, #tpu.memory_space<vmem>>) attributes {dimension_semantics = [#tpu.dimension_semantics<parallel>, #tpu.dimension_semantics<parallel>], iteration_bounds = array<i64: 2, 1>, scalar_prefetch = 0 : i64, scratch_operands = 0 : i64, tpu.core_type = #tpu.core_type<tc>, window_params = [{transform_indices = @transform_0, window_bounds = array<i64: 1, 56, 512>}, {transform_indices = @transform_1, window_bounds = array<i64: 1, 512, 56>}]} {
    %c0 = arith.constant 0 : index
    %c0_0 = arith.constant 0 : index
    %c0_1 = arith.constant 0 : index
    %0 = vector.load %arg2[%c0, %c0_0, %c0_1] : memref<1x56x512xf32, #tpu.memory_space<vmem>>, vector<1x56x512xf32>
    %1 = vector.shape_cast %0 : vector<1x56x512xf32> to vector<56x512xf32>
    %2 = tpu.transpose %1, [1, 0] : vector<56x512xf32> -> vector<512x56xf32>
    %c0_2 = arith.constant 0 : index
    %c0_3 = arith.constant 0 : index
    %c0_4 = arith.constant 0 : index
    %3 = vector.load %arg3[%c0_2, %c0_3, %c0_4] : memref<1x512x56xf32, #tpu.memory_space<vmem>>, vector<1x512x56xf32>
    %4 = vector.shape_cast %3 : vector<1x512x56xf32> to vector<512x56xf32>
    %5 = vector.shape_cast %2 : vector<512x56xf32> to vector<1x512x56xf32>
    tpu.vector_store %arg3[%c0_2, %c0_3, %c0_4], %5 {strides = array<i32>} : memref<1x512x56xf32, #tpu.memory_space<vmem>>, vector<1x512x56xf32>,
    return
  }
  func.func @transform_0(%arg0: i32, %arg1: i32) -> (i32, i32, i32) {
    %c0_i32 = arith.constant 0 : i32
    %c0_i32_0 = arith.constant 0 : i32
    return %arg0, %c0_i32, %arg1 : i32, i32, i32
  }
  func.func @transform_1(%arg0: i32, %arg1: i32) -> (i32, i32, i32) {
    %c0_i32 = arith.constant 0 : i32
    %c0_i32_0 = arith.constant 0 : i32
    return %arg0, %arg1, %c0_i32 : i32, i32, i32
  }
}

</mosaic_0001>

<bundles_post_ra>
// kernel: tpu_custom_call.1
= control target key start
LH: loop header
LB: loop body
LE: loop exit
PB: predicated region body
PF: predicated region fallthrough
CT: control target
= control target key end

     0   :  { %6 = vsyncpa [#allocation3], 0  ;;  %s926_s0 = inlined_call_operand.hbm [shape: f32[2,56,512], index: 0, kind: input, shape index: {}]   ;;  %s927_s1 = inlined_call_operand.vmem [shape: f32[2,512,56], index: 1, kind: output, shape index: {}]  }
   0x1   :  { %8 = vsyncpa [#allocation3 + $0x1], 0  ;;  %s648_s6 = smov 0   ;;  %s650_s7 = smov 0  }
   0x2   :  { %s652_s8 = smov 0   ;;  %s654_s9 = smov 0  }
   0x3   :  { %s656_s10 = smov 0   ;;  %s658_s11 = smov 0  }
   0x4 LB: > { %s481_s12 = sadd.s32 4294967295, %s633_s11   ;;  %s26_s13 = sadd.s32 1, %s629_s10  ;;  %s633_s11 = sphi %s658_s11, %s14_s11   ;;  %s629_s10 = sphi %s656_s10, %s934_s10   ;;  %s625_s9 = sphi %s654_s9, %s933_s9   ;;  %s621_s8 = sphi %s652_s8, %s932_s8   ;;  %s617_s7 = sphi %s650_s7, %s931_s7   ;;  %s613_s6 = sphi %s648_s6, %s930_s6  }
   0x5   : > { %p28_p0 = scmp.ge.s32.totalorder %s26_s13, 2  ;;  %s35_s14 = sadd.s32 1, %s621_s8 }
   0x6   : > { %p42_p1 = scmp.ne.s32.totalorder %s621_s8, %s617_s7  ;;  %p43_p2 = scmp.eq.s32.totalorder %s633_s11, 0 }
   0x7   : > { %s936_s13 = smov (%p28_p0, %s26_s13), 0  ;;  %p48_p4 = scmp.ne.s32.totalorder %s617_s7, %s613_s6 }
   0x8   : > { %p44_p3 = por %p43_p2, %p42_p1  ;;  %s30_s15 = ssub.s32 %s629_s10, %s936_s13 }
   0x9   : > { %p49_p5 = scmp.eq.s32.totalorder %s481_s12, 0  ;;  %p33_p6 = scmp.eq.s32.totalorder %s30_s15, 0 }
   0xa   : > { %p501_p8 = scmp.lt.s32.totalorder %s633_s11, 2  ;;  %s100_s18 = sand.u32 1, %s621_s8  }
   0xb   : > { %p687_p7 = por %p49_p5, %p48_p4  ;;  %s493_s19 = smul.u32 3584, %s629_s10 }
   0xc   : > { %s693_s17 = scalar_select %p33_p6, %s621_s8, %s35_s14  }
   0xd   : > { %s492_s20 = smul.u32 224, %s100_s18  ;;  %s700_s23 = scalar_lea.hbm %s926_s0, %s493_s19 }
   0xe   : > { %p702_p9 = pnand %p501_p8, %p44_p3  ;;  %s708_s27 = scalar_lea.sflag [#allocation3], %s100_s18 }
   0xf   : > { %s104_s25 = scalar_lea.vmem [#allocation2], %s492_s20  ;;  %s553_s28 = scalar_lea.hbm %s700_s23, 3584 }
  0x10   : > { %s113_s26 = sshll.u32 %s104_s25, 4  ;;  %p554_p10 = scmp.ne.s32.totalorder %s700_s23, %s553_s28  ;;  %s706_s26 = int_to_ptr.vmem [resolvable:$true] %s113_s26 }
  0x11   : > { %p555_p11 = pneg %p702_p9  ;;  %s558_s2 = scalar_lea.hbm %s926_s0, 7168 }
  0x12   : > { %p559_p0 = scmp.lt.u32.totalorder %s700_s23, %s926_s0  ;;  %p560_p1 = scmp.lt.u32.totalorder %s558_s2, %s553_s28 }
  0x13   : > { %p556_p12 = pnand %p555_p11, %p554_p10  ;;  %p562_p3 = scmp.lt.u32.totalorder %s553_s28, %s700_s23 }
  0x14   : > { %p561_p2 = por %p560_p1, %p559_p0 }
  0x15   : > { %p557_p13 = pneg %p556_p12 }
  0x16   : > { %p563_p4 = por %p562_p3, %p561_p2 }
  0x18   : > { %p564_p5 = pnand %p563_p4, %p557_p13 }
  0x1a   : > { %567 = shalt.err (!%p564_p5)
}
  0x1b   : > { %s568_s5 = scalar_lea.vmem %s706_s26, 3584  ;;  %s635_s6 = smov [#allocation2]  }
  0x1c   : > { %p569_p6 = scmp.ne.s32.totalorder %s706_s26, %s568_s5  ;;  %s573_s12 = sshll.u32 %s635_s6, 4  ;;  %s574_s12 = int_to_ptr.vmem [resolvable:$false] %s573_s12 }
  0x1d   : > { %s575_s14 = scalar_lea.vmem %s574_s12, 7168  ;;  %p576_p12 = scmp.lt.s32.totalorder %s706_s26, %s574_s12 }
  0x1e   : > { %p571_p8 = pnand %p569_p6, %p555_p11  ;;  %p577_p0 = scmp.lt.s32.totalorder %s575_s14, %s568_s5 }
  0x20   : > { %p572_p10 = pneg %p571_p8  ;;  %p578_p1 = por %p577_p0, %p576_p12 }
  0x22   : > { %p579_p2 = pnand %p578_p1, %p572_p10 }
  0x24   : > { %582 = shalt.err (!%p579_p2)
}
  0x25   : > { %s636_s15 = smov 512   ;;  %s637_s18 = smov 32  }
  0x26   : > { %500 = dma.hbm_to_vmem [thread:$0]  (!%p702_p9), %s700_s23, 3584, %s706_s26, %s708_s27, %s636_s15, %s636_s15, %s637_s18  }
  0x27   : > { %p486_p11 = scmp.ge.s32.totalorder %s633_s11, 1  ;;  %p121_p13 = scmp.lt.s32.totalorder %s633_s11, 3 }
  0x29   : > { %p122_p3 = pnand %p486_p11, %p121_p13 }
  0x2a   : > { %s127_s19 = sand.u32 (!%p122_p3), 1, %s617_s7  }
  0x2b   : > { %125 = sbr.rel (%p122_p3) target bundleno = 306 (0x132), region = 24  ;;  %s128_s21 = scalar_lea.sflag (!%p122_p3), [#allocation3], %s127_s19 }
  0x2c   : > { %s494_s20 = smul.u32 (!%p122_p3), 224, %s127_s19 }
  0x2e   : > { %s739_s22 = scalar_lea.vmem (!%p122_p3), [#allocation2], %s494_s20 }
  0x32   : > { %608 = dma.done.wait (%p687_p7), %s128_s21, 3584  }
  0x33   : > { %610 = vsyncadd (%p687_p7), %s128_s21, 4294963712  ;;  %v166_v0 = vld [vmem:[%s739_s22 + $0x8] sm:$0xff]  ;;  %v165_v1 = vld [vmem:[%s739_s22] sm:$0xff]  ;;  %p156_p7 = scmp.lt.s32.totalorder %s625_s9, 1  ;;  %vm321_vm0 = vcmask 457728  }
  0x34   : > { %225 = vxpose.xlu1.b32.start [1/7] (short) %v166_v0, 128  ;;  %193 = vxpose.xlu0.b32.start [1/7] (short) %v165_v1, 128  ;;  %v170_v2 = vld [vmem:[%s739_s22 + $0x28] sm:$0xff]  ;;  %v169_v3 = vld [vmem:[%s739_s22 + $0x20] sm:$0xff]  ;;  %v168_v14 = vld [vmem:[%s739_s22 + $0x18] sm:$0xff] }
  0x35   : > { %v174_v4 = vld [vmem:[%s739_s22 + $0x48] sm:$0xff]  ;;  %v173_v5 = vld [vmem:[%s739_s22 + $0x40] sm:$0xff]  ;;  %v167_v15 = vld [vmem:[%s739_s22 + $0x10] sm:$0xff]  ;;  %s938_s9 = smov (!%p156_p7, %s625_s9), 1 }
  0x36   : > { %v178_v6 = vld [vmem:[%s739_s22 + $0x68] sm:$0xff]  ;;  %v177_v7 = vld [vmem:[%s739_s22 + $0x60] sm:$0xff]  ;;  %v172_v16 = vld [vmem:[%s739_s22 + $0x38] sm:$0xff]  ;;  %s491_s16 = sshll.u32 %s938_s9, 9 }
  0x37   : > { %v182_v8 = vld [vmem:[%s739_s22 + $0x88] sm:$0xff]  ;;  %v181_v9 = vld [vmem:[%s739_s22 + $0x80] sm:$0xff]  ;;  %v171_v17 = vld [vmem:[%s739_s22 + $0x30] sm:$0xff]  ;;  %s778_s25 = scalar_lea.vmem %s927_s1, %s491_s16 }
  0x38   : > { %226 = vxpose.xlu1.b32.cont [2/7] (short) %v170_v2, 128  ;;  %194 = vxpose.xlu0.b32.cont [2/7] (short) %v169_v3, 128  ;;  %v186_v10 = vld [vmem:[%s739_s22 + $0xa8] sm:$0xff]  ;;  %v185_v11 = vld [vmem:[%s739_s22 + $0xa0] sm:$0xff]  ;;  %v176_v18 = vld [vmem:[%s739_s22 + $0x58] sm:$0xff] }
  0x39   : > { %v190_v12 = vld [vmem:[%s739_s22 + $0xc8] sm:$0xff]  ;;  %v189_v13 = vld [vmem:[%s739_s22 + $0xc0] sm:$0xff]  ;;  %v175_v19 = vld [vmem:[%s739_s22 + $0x50] sm:$0xff] }
  0x3a   : > { %v180_v20 = vld [vmem:[%s739_s22 + $0x78] sm:$0xff]  ;;  %v179_v21 = vld [vmem:[%s739_s22 + $0x70] sm:$0xff] }
  0x3b   : > { %v184_v22 = vld [vmem:[%s739_s22 + $0x98] sm:$0xff]  ;;  %v183_v23 = vld [vmem:[%s739_s22 + $0x90] sm:$0xff] }
  0x3c   : > { %227 = vxpose.xlu1.b32.cont [3/7] (short) %v174_v4, 128  ;;  %195 = vxpose.xlu0.b32.cont [3/7] (short) %v173_v5, 128  ;;  %v188_v24 = vld [vmem:[%s739_s22 + $0xb8] sm:$0xff]  ;;  %v187_v25 = vld [vmem:[%s739_s22 + $0xb0] sm:$0xff] }
  0x3d   : > { %v192_v26 = vld [vmem:[%s739_s22 + $0xd8] sm:$0xff]  ;;  %v191_v27 = vld [vmem:[%s739_s22 + $0xd0] sm:$0xff] }
  0x40   : > { %228 = vxpose.xlu1.b32.cont [4/7] (short) %v178_v6, 128  ;;  %196 = vxpose.xlu0.b32.cont [4/7] (short) %v177_v7, 128 }
  0x44   : > { %229 = vxpose.xlu1.b32.cont [5/7] (short) %v182_v8, 128  ;;  %197 = vxpose.xlu0.b32.cont [5/7] (short) %v181_v9, 128 }
  0x48   : > { %230 = vxpose.xlu1.b32.cont [6/7] (short) %v186_v10, 128  ;;  %198 = vxpose.xlu0.b32.cont [6/7] (short) %v185_v11, 128 }
  0x4c   : > { %231 = vxpose.xlu1.b32.end [7/7] (short) %v190_v12, 128  ;;  %199 = vxpose.xlu0.b32.end [7/7] (short) %v189_v13, 128 }
  0x71   : > { %289 = vxpose.xlu1.b32.start [1/7] (short) %v168_v14, 128  ;;  %257 = vxpose.xlu0.b32.start [1/7] (short) %v167_v15, 128 }
  0x75   : > { %290 = vxpose.xlu1.b32.cont [2/7] (short) %v172_v16, 128  ;;  %258 = vxpose.xlu0.b32.cont [2/7] (short) %v171_v17, 128 }
  0x79   : > { %291 = vxpose.xlu1.b32.cont [3/7] (short) %v176_v18, 128  ;;  %259 = vxpose.xlu0.b32.cont [3/7] (short) %v175_v19, 128 }
  0x7d   : > { %292 = vxpose.xlu1.b32.cont [4/7] (short) %v180_v20, 128  ;;  %260 = vxpose.xlu0.b32.cont [4/7] (short) %v179_v21, 128 }
  0x81   : > { %293 = vxpose.xlu1.b32.cont [5/7] (short) %v184_v22, 128  ;;  %261 = vxpose.xlu0.b32.cont [5/7] (short) %v183_v23, 128 }
  0x85   : > { %294 = vxpose.xlu1.b32.cont [6/7] (short) %v188_v24, 128  ;;  %262 = vxpose.xlu0.b32.cont [6/7] (short) %v187_v25, 128 }
  0x89   : > { %295 = vxpose.xlu1.b32.end [7/7] (short) %v192_v26, 128  ;;  %263 = vxpose.xlu0.b32.end [7/7] (short) %v191_v27, 128 }
  0xb4   : > { %v241_v28 = vpop.trf.xlu1  ;;  %v209_v29 = vpop.trf.xlu0 }
  0xb5   : > { %338 = vst.msk [vmem:[%s778_s25 + $0x80] sm:$0xff] %vm321_vm0, %v241_v28  ;;  %322 = vst.msk [vmem:[%s778_s25] sm:$0xff] %vm321_vm0, %v209_v29 }
  0xb8   : > { %v242_v30 = vpop.trf.xlu1  ;;  %v210_v31 = vpop.trf.xlu0 }
  0xb9   : > { %339 = vst.msk [vmem:[%s778_s25 + $0x88] sm:$0xff] %vm321_vm0, %v242_v30  ;;  %323 = vst.msk [vmem:[%s778_s25 + $0x8] sm:$0xff] %vm321_vm0, %v210_v31 }
  0xbc   : > { %v243_v32 = vpop.trf.xlu1  ;;  %v211_v33 = vpop.trf.xlu0 }
  0xbd   : > { %340 = vst.msk [vmem:[%s778_s25 + $0x90] sm:$0xff] %vm321_vm0, %v243_v32  ;;  %324 = vst.msk [vmem:[%s778_s25 + $0x10] sm:$0xff] %vm321_vm0, %v211_v33 }
  0xc0   : > { %v244_v34 = vpop.trf.xlu1  ;;  %v212_v35 = vpop.trf.xlu0 }
  0xc1   : > { %341 = vst.msk [vmem:[%s778_s25 + $0x98] sm:$0xff] %vm321_vm0, %v244_v34  ;;  %325 = vst.msk [vmem:[%s778_s25 + $0x18] sm:$0xff] %vm321_vm0, %v212_v35 }
  0xc4   : > { %v245_v36 = vpop.trf.xlu1  ;;  %v213_v37 = vpop.trf.xlu0 }
  0xc5   : > { %342 = vst.msk [vmem:[%s778_s25 + $0xa0] sm:$0xff] %vm321_vm0, %v245_v36  ;;  %326 = vst.msk [vmem:[%s778_s25 + $0x20] sm:$0xff] %vm321_vm0, %v213_v37 }
  0xc8   : > { %v246_v38 = vpop.trf.xlu1  ;;  %v214_v39 = vpop.trf.xlu0 }
  0xc9   : > { %343 = vst.msk [vmem:[%s778_s25 + $0xa8] sm:$0xff] %vm321_vm0, %v246_v38  ;;  %327 = vst.msk [vmem:[%s778_s25 + $0x28] sm:$0xff] %vm321_vm0, %v214_v39 }
  0xcc   : > { %v247_v40 = vpop.trf.xlu1  ;;  %v215_v41 = vpop.trf.xlu0 }
  0xcd   : > { %344 = vst.msk [vmem:[%s778_s25 + $0xb0] sm:$0xff] %vm321_vm0, %v247_v40  ;;  %328 = vst.msk [vmem:[%s778_s25 + $0x30] sm:$0xff] %vm321_vm0, %v215_v41 }
  0xd0   : > { %v248_v42 = vpop.trf.xlu1  ;;  %v216_v43 = vpop.trf.xlu0 }
  0xd1   : > { %345 = vst.msk [vmem:[%s778_s25 + $0xb8] sm:$0xff] %vm321_vm0, %v248_v42  ;;  %329 = vst.msk [vmem:[%s778_s25 + $0x38] sm:$0xff] %vm321_vm0, %v216_v43 }
  0xd4   : > { %v249_v44 = vpop.trf.xlu1  ;;  %v217_v45 = vpop.trf.xlu0 }
  0xd5   : > { %346 = vst.msk [vmem:[%s778_s25 + $0xc0] sm:$0xff] %vm321_vm0, %v249_v44  ;;  %330 = vst.msk [vmem:[%s778_s25 + $0x40] sm:$0xff] %vm321_vm0, %v217_v45 }
  0xd8   : > { %v250_v46 = vpop.trf.xlu1  ;;  %v218_v47 = vpop.trf.xlu0 }
  0xd9   : > { %347 = vst.msk [vmem:[%s778_s25 + $0xc8] sm:$0xff] %vm321_vm0, %v250_v46  ;;  %331 = vst.msk [vmem:[%s778_s25 + $0x48] sm:$0xff] %vm321_vm0, %v218_v47 }
  0xdc   : > { %v251_v48 = vpop.trf.xlu1  ;;  %v219_v49 = vpop.trf.xlu0 }
  0xdd   : > { %348 = vst.msk [vmem:[%s778_s25 + $0xd0] sm:$0xff] %vm321_vm0, %v251_v48  ;;  %332 = vst.msk [vmem:[%s778_s25 + $0x50] sm:$0xff] %vm321_vm0, %v219_v49 }
  0xe0   : > { %v252_v50 = vpop.trf.xlu1  ;;  %v220_v51 = vpop.trf.xlu0 }
  0xe1   : > { %349 = vst.msk [vmem:[%s778_s25 + $0xd8] sm:$0xff] %vm321_vm0, %v252_v50  ;;  %333 = vst.msk [vmem:[%s778_s25 + $0x58] sm:$0xff] %vm321_vm0, %v220_v51 }
  0xe4   : > { %v253_v52 = vpop.trf.xlu1  ;;  %v221_v53 = vpop.trf.xlu0 }
  0xe5   : > { %350 = vst.msk [vmem:[%s778_s25 + $0xe0] sm:$0xff] %vm321_vm0, %v253_v52  ;;  %334 = vst.msk [vmem:[%s778_s25 + $0x60] sm:$0xff] %vm321_vm0, %v221_v53 }
  0xe8   : > { %v254_v54 = vpop.trf.xlu1  ;;  %v222_v55 = vpop.trf.xlu0 }
  0xe9   : > { %351 = vst.msk [vmem:[%s778_s25 + $0xe8] sm:$0xff] %vm321_vm0, %v254_v54  ;;  %335 = vst.msk [vmem:[%s778_s25 + $0x68] sm:$0xff] %vm321_vm0, %v222_v55 }
  0xec   : > { %v255_v56 = vpop.trf.xlu1  ;;  %v223_v57 = vpop.trf.xlu0 }
  0xed   : > { %352 = vst.msk [vmem:[%s778_s25 + $0xf0] sm:$0xff] %vm321_vm0, %v255_v56  ;;  %336 = vst.msk [vmem:[%s778_s25 + $0x70] sm:$0xff] %vm321_vm0, %v223_v57 }
  0xf0   : > { %v256_v58 = vpop.trf.xlu1  ;;  %v224_v59 = vpop.trf.xlu0 }
  0xf1   : > { %353 = vst.msk [vmem:[%s778_s25 + $0xf8] sm:$0xff] %vm321_vm0, %v256_v58  ;;  %337 = vst.msk [vmem:[%s778_s25 + $0x78] sm:$0xff] %vm321_vm0, %v224_v59 }
  0xf4   : > { %v305_v60 = vpop.trf.xlu1  ;;  %v273_v61 = vpop.trf.xlu0 }
  0xf5   : > { %370 = vst.msk [vmem:[%s778_s25 + $0x180] sm:$0xff] %vm321_vm0, %v305_v60  ;;  %354 = vst.msk [vmem:[%s778_s25 + $0x100] sm:$0xff] %vm321_vm0, %v273_v61 }
  0xf8   : > { %v306_v62 = vpop.trf.xlu1  ;;  %v274_v63 = vpop.trf.xlu0 }
  0xf9   : > { %371 = vst.msk [vmem:[%s778_s25 + $0x188] sm:$0xff] %vm321_vm0, %v306_v62  ;;  %355 = vst.msk [vmem:[%s778_s25 + $0x108] sm:$0xff] %vm321_vm0, %v274_v63 }
  0xfc   : > { %v307_v0 = vpop.trf.xlu1  ;;  %v275_v1 = vpop.trf.xlu0 }
  0xfd   : > { %372 = vst.msk [vmem:[%s778_s25 + $0x190] sm:$0xff] %vm321_vm0, %v307_v0  ;;  %356 = vst.msk [vmem:[%s778_s25 + $0x110] sm:$0xff] %vm321_vm0, %v275_v1 }
 0x100   : > { %v308_v2 = vpop.trf.xlu1  ;;  %v276_v3 = vpop.trf.xlu0 }
 0x101   : > { %373 = vst.msk [vmem:[%s778_s25 + $0x198] sm:$0xff] %vm321_vm0, %v308_v2  ;;  %357 = vst.msk [vmem:[%s778_s25 + $0x118] sm:$0xff] %vm321_vm0, %v276_v3 }
 0x104   : > { %v309_v4 = vpop.trf.xlu1  ;;  %v277_v5 = vpop.trf.xlu0 }
 0x105   : > { %374 = vst.msk [vmem:[%s778_s25 + $0x1a0] sm:$0xff] %vm321_vm0, %v309_v4  ;;  %358 = vst.msk [vmem:[%s778_s25 + $0x120] sm:$0xff] %vm321_vm0, %v277_v5 }
 0x108   : > { %v310_v6 = vpop.trf.xlu1  ;;  %v278_v7 = vpop.trf.xlu0 }
 0x109   : > { %375 = vst.msk [vmem:[%s778_s25 + $0x1a8] sm:$0xff] %vm321_vm0, %v310_v6  ;;  %359 = vst.msk [vmem:[%s778_s25 + $0x128] sm:$0xff] %vm321_vm0, %v278_v7 }
 0x10c   : > { %v311_v8 = vpop.trf.xlu1  ;;  %v279_v9 = vpop.trf.xlu0 }
 0x10d   : > { %376 = vst.msk [vmem:[%s778_s25 + $0x1b0] sm:$0xff] %vm321_vm0, %v311_v8  ;;  %360 = vst.msk [vmem:[%s778_s25 + $0x130] sm:$0xff] %vm321_vm0, %v279_v9 }
 0x110   : > { %v312_v10 = vpop.trf.xlu1  ;;  %v280_v11 = vpop.trf.xlu0 }
 0x111   : > { %377 = vst.msk [vmem:[%s778_s25 + $0x1b8] sm:$0xff] %vm321_vm0, %v312_v10  ;;  %361 = vst.msk [vmem:[%s778_s25 + $0x138] sm:$0xff] %vm321_vm0, %v280_v11 }
 0x114   : > { %v313_v12 = vpop.trf.xlu1  ;;  %v281_v13 = vpop.trf.xlu0 }
 0x115   : > { %378 = vst.msk [vmem:[%s778_s25 + $0x1c0] sm:$0xff] %vm321_vm0, %v313_v12  ;;  %362 = vst.msk [vmem:[%s778_s25 + $0x140] sm:$0xff] %vm321_vm0, %v281_v13 }
 0x118   : > { %v314_v14 = vpop.trf.xlu1  ;;  %v282_v15 = vpop.trf.xlu0 }
 0x119   : > { %379 = vst.msk [vmem:[%s778_s25 + $0x1c8] sm:$0xff] %vm321_vm0, %v314_v14  ;;  %363 = vst.msk [vmem:[%s778_s25 + $0x148] sm:$0xff] %vm321_vm0, %v282_v15 }
 0x11c   : > { %v315_v16 = vpop.trf.xlu1  ;;  %v283_v17 = vpop.trf.xlu0 }
 0x11d   : > { %380 = vst.msk [vmem:[%s778_s25 + $0x1d0] sm:$0xff] %vm321_vm0, %v315_v16  ;;  %364 = vst.msk [vmem:[%s778_s25 + $0x150] sm:$0xff] %vm321_vm0, %v283_v17 }
 0x120   : > { %v316_v18 = vpop.trf.xlu1  ;;  %v284_v19 = vpop.trf.xlu0 }
 0x121   : > { %381 = vst.msk [vmem:[%s778_s25 + $0x1d8] sm:$0xff] %vm321_vm0, %v316_v18  ;;  %365 = vst.msk [vmem:[%s778_s25 + $0x158] sm:$0xff] %vm321_vm0, %v284_v19 }
 0x124   : > { %v317_v20 = vpop.trf.xlu1  ;;  %v285_v21 = vpop.trf.xlu0 }
 0x125   : > { %382 = vst.msk [vmem:[%s778_s25 + $0x1e0] sm:$0xff] %vm321_vm0, %v317_v20  ;;  %366 = vst.msk [vmem:[%s778_s25 + $0x160] sm:$0xff] %vm321_vm0, %v285_v21 }
 0x128   : > { %v318_v22 = vpop.trf.xlu1  ;;  %v286_v23 = vpop.trf.xlu0 }
 0x129   : > { %383 = vst.msk [vmem:[%s778_s25 + $0x1e8] sm:$0xff] %vm321_vm0, %v318_v22  ;;  %367 = vst.msk [vmem:[%s778_s25 + $0x168] sm:$0xff] %vm321_vm0, %v286_v23 }
 0x12c   : > { %v319_v24 = vpop.trf.xlu1  ;;  %v287_v25 = vpop.trf.xlu0 }
 0x12d   : > { %384 = vst.msk [vmem:[%s778_s25 + $0x1f0] sm:$0xff] %vm321_vm0, %v319_v24  ;;  %368 = vst.msk [vmem:[%s778_s25 + $0x170] sm:$0xff] %vm321_vm0, %v287_v25 }
 0x130   : > { %v320_v26 = vpop.trf.xlu1  ;;  %v288_v27 = vpop.trf.xlu0 }
 0x131   : > { %385 = vst.msk [vmem:[%s778_s25 + $0x1f8] sm:$0xff] %vm321_vm0, %v320_v26  ;;  %369 = vst.msk [vmem:[%s778_s25 + $0x178] sm:$0xff] %vm321_vm0, %v288_v27 }
 0x132 PF: > { %s14_s11 = sadd.s32 1, %s633_s11   ;;  %s930_s6 = smov %s617_s7 }
 0x133   : > { %p11_p9 = scmp.ge.s32.totalorder %s14_s11, 4   ;;  %s931_s7 = smov %s621_s8 }
 0x134   : > { %s932_s8 = smov %s693_s17  ;;  %s933_s9 = smov %s629_s10 }
 0x135   : > { %s934_s10 = smov %s936_s13  ;;  %13 = sbr.rel (!%p11_p9) target bundleno = 4 (0x4), region = 64 }
 0x13c   :  { %416 = vsyncpa [#allocation3], 1 }
 0x13d   :  { %418 = vsyncpa [#allocation3 + $0x1], 1 }

</bundles_post_ra>
